<compile_context>
chip_gen: v6e
topology: v6e:2x2x1
jax: 0.10.0
libtpu: 0.0.40
codegen_flags: <defaults>
</compile_context>

<pallas_src>
import jax
import jax.numpy as jnp
from jax import lax
from jax.experimental import pallas as pl
from jax.experimental.pallas import tpu as pltpu

EOT_SAMPLES = 4          # params.eot_samples
NUM_CLASSES = 10         # num_classes
NOISE_LOC = 0.0          # params.noise['loc_normal']
NOISE_SCALE = 0.1        # params.noise['scale_normal']  (distribution='normal')
LANES = 128              # TPU lane width


def eot_kernel(x_ref, noise_ref, w_ref, b_ref, o_ref, xn_ref):
    """Fused EOT forward: repeat_interleave + noise add + linear model + mean over copies.

    x_ref:     (B, D)     f32   flattened input batch
    noise_ref: (B*S, D)   bf16  iid Normal draws, row = b*S + s (repeat_interleave order)
    w_ref:     (D, NP)    bf16  zero-padded weights (NP = num_classes padded to 128 lanes)
    b_ref:     (1, NP)    f32   zero-padded bias
    o_ref:     (B, NP)    f32   mean-over-EOT logits (padded)
    xn_ref:    (B*S, D)   f32   VMEM scratch: noisy repeated inputs (matmul LHS staging)
    """
    B = x_ref.shape[0]
    SB = noise_ref.shape[0]
    S = SB // B

    # repeat_interleave(x, S, dim=0) + noise via per-batch contiguous-slice adds:
    # one f32 add per element, no iota/compare/select masks. Noise is bf16 in HBM only to
    # halve its DMA bytes; the upcast here is a plain VPU convert (safe on v5e).
    for b_i in range(B):                                   # B is small & static -> unrolled
        sl = pl.ds(b_i * S, S)
        xn_ref[sl, :] = noise_ref[sl, :].astype(jnp.float32) + x_ref[b_i:b_i + 1, :]

    # One MXU pass for all EOT copies: (S*B, D) @ (D, NP). bf16 operands (cast only at the
    # MXU boundary), f32 accumulation.
    logits = jnp.dot(xn_ref[...].astype(w_ref.dtype), w_ref[...],
                     preferred_element_type=jnp.float32)   # (S*B, NP) f32

    # Mean over the S EOT copies: one cross-sublane (XLU) sum per batch element instead of a
    # length-S serial add chain per row; bias read once; single lane-dense store.
    inv_s = 1.0 / S
    mean_rows = [
        jnp.sum(logits[b_i * S:(b_i + 1) * S, :], axis=0, keepdims=True)
        for b_i in range(B)
    ]
    mean_logits = jnp.concatenate(mean_rows, axis=0) * inv_s        # (B, NP)
    o_ref[...] = (mean_logits + b_ref[...]).astype(o_ref.dtype)


def prepare_model_params(w, b):
    """One-time (init-time) padding of the synthetic linear model to 128 lanes + bf16 cast.

    Hoisted out of the forward path so the ~12.8x-inflated padded weight is not
    re-materialized (pad + cast + HBM round trip) on every call.
    """
    D, N = w.shape
    NP = ((N + LANES - 1) // LANES) * LANES
    w_pad = jnp.zeros((D, NP), jnp.float32).at[:, :N].set(w).astype(jnp.bfloat16)
    b_pad = jnp.zeros((1, NP), jnp.float32).at[:, :N].set(b)
    return w_pad, b_pad


def eot_forward(x_nchw, w_pad, b_pad, noise, num_classes=NUM_CLASSES):
    """EOTWrapper.forward. x:[B,C,H,W], w_pad:[D,NP] bf16, b_pad:[1,NP] f32, noise:[B,S,D]."""
    B = x_nchw.shape[0]
    D, NP = w_pad.shape
    S = noise.shape[1]

    x2d = x_nchw.reshape(B, D).astype(jnp.float32)            # torch .view(B, -1)
    # Noise shipped bf16 (halves the dominant HBM stream); row = b*S + s matches
    # torch.repeat_interleave ordering.
    noise2d = noise.astype(jnp.bfloat16).reshape(B * S, D)

    # Everything fits trivially in VMEM at these sizes (x 8 KiB, noise 16 KiB bf16,
    # W 256 KiB), so there is no grid: one invocation, one MXU pass. See header for the
    # production tiling plan (K grid axis, parallel batch axis, vmem_limit_bytes on v7x).
    out_pad = pl.pallas_call(
        eot_kernel,
        out_shape=jax.ShapeDtypeStruct((B, NP), jnp.float32),
        in_specs=[
            pl.BlockSpec(memory_space=pltpu.MemorySpace.VMEM),   # x2d
            pl.BlockSpec(memory_space=pltpu.MemorySpace.VMEM),   # noise (bf16)
            pl.BlockSpec(memory_space=pltpu.MemorySpace.VMEM),   # W (bf16, padded)
            pl.BlockSpec(memory_space=pltpu.MemorySpace.VMEM),   # bias (padded)
        ],
        out_specs=pl.BlockSpec(memory_space=pltpu.MemorySpace.VMEM),
        scratch_shapes=[pltpu.VMEM((B * S, D), jnp.float32)],    # matmul-LHS staging
    )(x2d, noise2d, w_pad, b_pad)
    return out_pad[:, :num_classes]


if __name__ == "__main__":
    key = jax.random.PRNGKey(0)
    kx, kw, kb, kn = jax.random.split(key, 4)

    B, C, H, W = 2, 4, 16, 16
    D = C * H * W

    # Deterministic synthetic inputs / model parameters.
    x = jax.random.normal(kx, (B, C, H, W), jnp.float32)
    w = jax.random.normal(kw, (D, NUM_CLASSES), jnp.float32) * 0.02
    b = jax.random.normal(kb, (NUM_CLASSES,), jnp.float32) * 0.01

    # EOT noise ~ Normal(loc, scale): one independent draw per (batch, eot copy, feature),
    # equivalent to AddNoise applied after torch.repeat_interleave(x, S, dim=0).
    # TODO(synk): at production sizes generate this in-kernel (pltpu.prng_seed +
    # pltpu.stateful_normal) to drop the [B*S, D] HBM noise stream entirely; it is kept as a
    # (bf16) input here so the kernel can be verified exactly against a plain-JAX reference.
    noise = NOISE_LOC + NOISE_SCALE * jax.random.normal(
        kn, (B, EOT_SAMPLES, D), jnp.float32)

    w_pad, b_pad = prepare_model_params(w, b)     # one-time init, outside the hot path
    out = jax.block_until_ready(eot_forward(x, w_pad, b_pad, noise))

    # Plain-JAX reference of the same forward (repeat -> noise -> linear -> mean over EOT),
    # mirroring the kernel's rounding: bf16 noise transport, bf16 MXU operands, f32 math.
    x2d = x.reshape(B, D)
    noise_bf = noise.astype(jnp.bfloat16).astype(jnp.float32)
    xn = (x2d[:, None, :] + noise_bf).astype(jnp.bfloat16).astype(jnp.float32)  # (B, S, D)
    w_bf = w.astype(jnp.bfloat16).astype(jnp.float32)
    logits = jnp.einsum("bsd,dn->bsn", xn, w_bf) + b
    ref = jnp.mean(logits, axis=1)

    assert out.shape == (B, NUM_CLASSES)
    assert jnp.allclose(out, ref, atol=1e-3, rtol=1e-3), "Pallas kernel mismatch vs reference"

    print("KERNEL_OK")
</pallas_src>

<mosaic_0001>
module attributes {stable_mosaic.version = 11 : i64} {
  func.func @eot_kernel(%arg0: memref<2x1024xf32, #tpu.memory_space<vmem>>, %arg1: memref<8x1024xbf16, #tpu.memory_space<vmem>>, %arg2: memref<1024x128xbf16, #tpu.memory_space<vmem>>, %arg3: memref<1x128xf32, #tpu.memory_space<vmem>>, %arg4: memref<2x128xf32, #tpu.memory_space<vmem>>, %arg5: memref<8x1024xf32, #tpu.memory_space<vmem>>) attributes {dimension_semantics = [], scalar_prefetch = 0 : i64, scratch_operands = 1 : i64, tpu.core_type = #tpu.core_type<tc>} {
    %c0 = arith.constant 0 : index
    %c0_0 = arith.constant 0 : index
    %0 = vector.load %arg1[%c0, %c0_0] : memref<8x1024xbf16, #tpu.memory_space<vmem>>, vector<4x1024xbf16>
    %1 = arith.extf %0 : vector<4x1024xbf16> to vector<4x1024xf32>
    %c0_1 = arith.constant 0 : index
    %c0_2 = arith.constant 0 : index
    %2 = vector.load %arg0[%c0_1, %c0_2] : memref<2x1024xf32, #tpu.memory_space<vmem>>, vector<1x1024xf32>
    %3 = vector.broadcast %2 : vector<1x1024xf32> to vector<4x1024xf32>
    %4 = arith.addf %1, %3 : vector<4x1024xf32>
    %c0_3 = arith.constant 0 : index
    %c0_4 = arith.constant 0 : index
    %5 = vector.load %arg5[%c0_3, %c0_4] : memref<8x1024xf32, #tpu.memory_space<vmem>>, vector<4x1024xf32>
    tpu.vector_store %arg5[%c0_3, %c0_4], %4 {strides = array<i32>} : memref<8x1024xf32, #tpu.memory_space<vmem>>, vector<4x1024xf32>,
    %c4 = arith.constant 4 : index
    %c0_5 = arith.constant 0 : index
    %6 = vector.load %arg1[%c4, %c0_5] : memref<8x1024xbf16, #tpu.memory_space<vmem>>, vector<4x1024xbf16>
    %7 = arith.extf %6 : vector<4x1024xbf16> to vector<4x1024xf32>
    %c1 = arith.constant 1 : index
    %c0_6 = arith.constant 0 : index
    %8 = vector.load %arg0[%c1, %c0_6] : memref<2x1024xf32, #tpu.memory_space<vmem>>, vector<1x1024xf32>
    %9 = vector.broadcast %8 : vector<1x1024xf32> to vector<4x1024xf32>
    %10 = arith.addf %7, %9 : vector<4x1024xf32>
    %c4_7 = arith.constant 4 : index
    %c0_8 = arith.constant 0 : index
    %11 = vector.load %arg5[%c4_7, %c0_8] : memref<8x1024xf32, #tpu.memory_space<vmem>>, vector<4x1024xf32>
    tpu.vector_store %arg5[%c4_7, %c0_8], %10 {strides = array<i32>} : memref<8x1024xf32, #tpu.memory_space<vmem>>, vector<4x1024xf32>,
    %c0_9 = arith.constant 0 : index
    %c0_10 = arith.constant 0 : index
    %12 = vector.load %arg5[%c0_9, %c0_10] : memref<8x1024xf32, #tpu.memory_space<vmem>>, vector<8x1024xf32>
    %13 = arith.truncf %12 : vector<8x1024xf32> to vector<8x1024xbf16>
    %c0_11 = arith.constant 0 : index
    %c0_12 = arith.constant 0 : index
    %14 = vector.load %arg2[%c0_11, %c0_12] : memref<1024x128xbf16, #tpu.memory_space<vmem>>, vector<1024x128xbf16>
    %cst = arith.constant dense<0.000000e+00> : vector<8x128xf32>
    %15 = tpu.matmul %13, %14, %cst {dimension_numbers = #tpu.dot_dimension_numbers<[1], [0], [0], [1], [0, 0, 1, 1], [], []>} : vector<8x1024xbf16>, vector<1024x128xbf16>, vector<8x128xf32> -> vector<8x128xf32>
    %16 = vector.extract_strided_slice %15 {offsets = [0, 0], sizes = [4, 128], strides = [1, 1]} : vector<8x128xf32> to vector<4x128xf32>
    %cst_13 = arith.constant dense<0.000000e+00> : vector<128xf32>
    %17 = vector.multi_reduction <add>, %16, %cst_13 [0] : vector<4x128xf32> to vector<128xf32>
    %18 = vector.shape_cast %17 : vector<128xf32> to vector<1x128xf32>
    %19 = vector.extract_strided_slice %15 {offsets = [4, 0], sizes = [4, 128], strides = [1, 1]} : vector<8x128xf32> to vector<4x128xf32>
    %cst_14 = arith.constant dense<0.000000e+00> : vector<128xf32>
    %20 = vector.multi_reduction <add>, %19, %cst_14 [0] : vector<4x128xf32> to vector<128xf32>
    %21 = vector.shape_cast %20 : vector<128xf32> to vector<1x128xf32>
    %22 = tpu.concatenate %18, %21 in 0 : vector<1x128xf32>, vector<1x128xf32> -> vector<2x128xf32>
    %cst_15 = arith.constant 2.500000e-01 : f32
    %23 = vector.broadcast %cst_15 : f32 to vector<2x128xf32>
    %24 = arith.mulf %22, %23 : vector<2x128xf32>
    %c0_16 = arith.constant 0 : index
    %c0_17 = arith.constant 0 : index
    %25 = vector.load %arg3[%c0_16, %c0_17] : memref<1x128xf32, #tpu.memory_space<vmem>>, vector<1x128xf32>
    %26 = vector.broadcast %25 : vector<1x128xf32> to vector<2x128xf32>
    %27 = arith.addf %24, %26 : vector<2x128xf32>
    %c0_18 = arith.constant 0 : index
    %c0_19 = arith.constant 0 : index
    %28 = vector.load %arg4[%c0_18, %c0_19] : memref<2x128xf32, #tpu.memory_space<vmem>>, vector<2x128xf32>
    tpu.vector_store %arg4[%c0_18, %c0_19], %27 {strides = array<i32>} : memref<2x128xf32, #tpu.memory_space<vmem>>, vector<2x128xf32>,
    return
  }
}

</mosaic_0001>

<bundles_post_ra>
// kernel: tpu_custom_call.1
= control target key start
LH: loop header
LB: loop body
LE: loop exit
PB: predicated region body
PF: predicated region fallthrough
CT: control target
= control target key end

     0   :  { %9 = vsyncpa [#allocation4], 0  ;;  %s1316_s0 = inlined_call_operand.hbm [shape: f32[2,1024], index: 0, kind: input, shape index: {}]   ;;  %s1317_s1 = inlined_call_operand.hbm [shape: bf16[8,1024], index: 1, kind: input, shape index: {}]   ;;  %s1318_s2 = inlined_call_operand.hbm [shape: bf16[1024,128], index: 2, kind: input, shape index: {}]   ;;  %s1319_s3 = inlined_call_operand.vmem [shape: f32[1,128], index: 3, kind: input, shape index: {}]   ;;  %s1320_s4 = inlined_call_operand.hbm [shape: f32[2,128], index: 4, kind: output, shape index: {}]  }
   0x1   :  { %10 = vsyncpa [#allocation7], 0 }
   0x2   :  { %11 = vsyncpa [#allocation5], 0  ;;  %s1240_s15 = smov [#allocation6]   ;;  %s1241_s17 = smov [#allocation3]  }
   0x3   :  { %s28_s16 = sshll.u32 %s1240_s15, 4  ;;  %s18_s18 = sshll.u32 %s1241_s17, 4  ;;  %s29_s16 = int_to_ptr.vmem [resolvable:$true] %s28_s16  ;;  %s19_s18 = int_to_ptr.vmem [resolvable:$true] %s18_s18 }
   0x4   :  { %s1162_s19 = scalar_lea.vmem %s29_s16, 512  ;;  %p1167_p1 = scmp.lt.s32.totalorder %s29_s16, %s29_s16 }
   0x5   :  { %p1163_p0 = scmp.ne.s32.totalorder %s29_s16, %s1162_s19  ;;  %p1168_p2 = scmp.lt.s32.totalorder %s1162_s19, %s1162_s19 }
   0x7   :  { %p1169_p3 = por %p1168_p2, %p1167_p1 }
   0x9   :  { %p1170_p4 = pnand %p1169_p3, %p1163_p0 }
   0xb   :  { %1173 = shalt.err (!%p1170_p4)
}
   0xc   :  { %31 = dma.hbm_to_vmem [thread:$0]  %s1317_s1, 512, %s29_s16, [#allocation7]  }
   0xd   :  { %s1182_s22 = scalar_lea.vmem %s19_s18, 256  ;;  %p1187_p6 = scmp.lt.s32.totalorder %s19_s18, %s19_s18 }
   0xe   :  { %p1183_p5 = scmp.ne.s32.totalorder %s19_s18, %s1182_s22  ;;  %p1188_p7 = scmp.lt.s32.totalorder %s1182_s22, %s1182_s22 }
  0x10   :  { %p1189_p8 = por %p1188_p7, %p1187_p6 }
  0x12   :  { %p1190_p9 = pnand %p1189_p8, %p1183_p5 }
  0x14   :  { %1193 = shalt.err (!%p1190_p9)
}
  0x15   :  { %21 = dma.hbm_to_vmem [thread:$0]  %s1316_s0, 256, %s19_s18, [#allocation4]  }
  0x16   :  { %s1242_s25 = smov [#allocation8]  }
  0x17   :  { %s37_s26 = sshll.u32 %s1242_s25, 4  ;;  %s38_s26 = int_to_ptr.vmem [resolvable:$true] %s37_s26 }
  0x18   :  { %s1202_s27 = scalar_lea.vmem %s38_s26, 8192  ;;  %p1207_p11 = scmp.lt.s32.totalorder %s38_s26, %s38_s26 }
  0x19   :  { %p1203_p10 = scmp.ne.s32.totalorder %s38_s26, %s1202_s27  ;;  %p1208_p12 = scmp.lt.s32.totalorder %s1202_s27, %s1202_s27 }
  0x1b   :  { %p1209_p13 = por %p1208_p12, %p1207_p11 }
  0x1d   :  { %p1210_p0 = pnand %p1209_p13, %p1203_p10 }
  0x1f   :  { %1213 = shalt.err (!%p1210_p0)
}
  0x20   :  { %s1243_s1 = smov 64   ;;  %s1244_s28 = smov 4  }
  0x21   :  { %43 = dma.hbm_to_vmem [thread:$0]  %s1318_s2, 8192, %s38_s26, [#allocation7], %s1243_s1, %s1243_s1, %s1244_s28  }
  0x22   :  { %1234 = dma.done.wait [#allocation4], 256  }
  0x23   :  { %1235 = vsyncadd [#allocation4], 4294967040 }
  0x24   :  { %1236 = dma.done.wait [#allocation7], 8704  }
  0x25   :  { %1237 = vsyncadd [#allocation7], 4294958592  ;;  %v1090_v0 = vld [vmem:[#allocation8 + $0x78] sm:$0xff]   ;;  %v1094_v4 = vld [vmem:[#allocation8 + $0x70] sm:$0xff]   ;;  %v70_v21 = vlaneseq  ;;  %vm885_vm0 = vcmask 1043456   ;;  %vm903_vm1 = vcmask 1040384  }
  0x26   :  { %v1091_v1 = vld [vmem:[#allocation8 + $0xf8] sm:$0xff]   ;;  %996 = vmatprep.subr.bf16.mxu0 %v1090_v0  ;;  %v1095_v5 = vld [vmem:[#allocation8 + $0xf0] sm:$0xff]   ;;  %v1098_v8 = vld [vmem:[#allocation8 + $0x68] sm:$0xff]   ;;  %s1245_s5 = smov [#allocation9]  }
  0x27   :  { %v1092_v2 = vld [vmem:[#allocation8 + $0x38] sm:$0xff]   ;;  %1018 = vmatprep.subr.bf16.mxu1 %v1091_v1  ;;  %v1096_v6 = vld [vmem:[#allocation8 + $0x30] sm:$0xff]   ;;  %v1099_v9 = vld [vmem:[#allocation8 + $0xe8] sm:$0xff]   ;;  %v1280_v26 = vshrl.u32 %v70_v21, 7  ;;  %s921_s6 = sshll.u32 %s1245_s5, 4  ;;  %s922_s6 = int_to_ptr.vmem [resolvable:$true] %s921_s6 }
  0x28   :  { %v1093_v3 = vld [vmem:[#allocation8 + $0xb8] sm:$0xff]   ;;  %997 = vmatpush3.bf16.msra.mxu0 %v1092_v2  ;;  %v1097_v7 = vld [vmem:[#allocation8 + $0xb0] sm:$0xff]   ;;  %v1100_v10 = vld [vmem:[#allocation8 + $0x28] sm:$0xff]   ;;  %s1214_s7 = scalar_lea.vmem %s922_s6, 32  ;;  %p1219_p2 = scmp.lt.s32.totalorder %s922_s6, %s922_s6 }
  0x29   :  { %1019 = vmatpush3.bf16.msra.mxu1 %v1093_v3  ;;  %998 = vmatprep.subr.bf16.mxu0 %v1094_v4  ;;  %v1101_v11 = vld [vmem:[#allocation8 + $0xa8] sm:$0xff]   ;;  %v1102_v12 = vld [vmem:[#allocation8 + $0x60] sm:$0xff]   ;;  %v1106_v16 = vld [vmem:[#allocation8 + $0x58] sm:$0xff]   ;;  %v76_v31 = vsub.s32 1, %v1280_v26  ;;  %v84_v33 = vsub.s32 3, %v1280_v26  ;;  %v72_v35 = vsub.s32 0, %v1280_v26  ;;  %p1215_p1 = scmp.ne.s32.totalorder %s922_s6, %s1214_s7  ;;  %p1220_p3 = scmp.lt.s32.totalorder %s1214_s7, %s1214_s7 }
  0x2a   :  { %1020 = vmatprep.subr.bf16.mxu1 %v1095_v5  ;;  %v1103_v13 = vld [vmem:[#allocation8 + $0xe0] sm:$0xff]   ;;  %v1107_v17 = vld [vmem:[#allocation8 + $0xd8] sm:$0xff]   ;;  %v1110_v20 = vld [vmem:[#allocation8 + $0x50] sm:$0xff]   ;;  %v80_v37 = vsub.s32 2, %v1280_v26 }
  0x2b   :  { %v1104_v14 = vld [vmem:[#allocation8 + $0x20] sm:$0xff]   ;;  %v1108_v18 = vld [vmem:[#allocation8 + $0x18] sm:$0xff]   ;;  %v1111_v22 = vld [vmem:[#allocation8 + $0xd0] sm:$0xff]   ;;  %p1221_p4 = por %p1220_p3, %p1219_p2 }
  0x2c   :  { %999 = vmatpush3.bf16.msra.mxu0 %v1096_v6  ;;  %v1105_v15 = vld [vmem:[#allocation8 + $0xa0] sm:$0xff]   ;;  %v1109_v19 = vld [vmem:[#allocation8 + $0x98] sm:$0xff]   ;;  %v1112_v23 = vld [vmem:[#allocation8 + $0x10] sm:$0xff]  }
  0x2d   :  { %1021 = vmatpush3.bf16.msra.mxu1 %v1097_v7  ;;  %1000 = vmatprep.subr.bf16.mxu0 %v1098_v8  ;;  %v1113_v24 = vld [vmem:[#allocation8 + $0x90] sm:$0xff]   ;;  %v1114_v25 = vld [vmem:[#allocation8 + $0x48] sm:$0xff]   ;;  %v1118_v30 = vld [vmem:[#allocation8 + $0x40] sm:$0xff]   ;;  %p1222_p5 = pnand %p1221_p4, %p1215_p1 }
  0x2e   :  { %1022 = vmatprep.subr.bf16.mxu1 %v1099_v9  ;;  %v1115_v27 = vld [vmem:[#allocation8 + $0xc8] sm:$0xff]   ;;  %v1119_v32 = vld [vmem:[#allocation8 + $0xc0] sm:$0xff]   ;;  %v1286_v39 = vld [vmem:[#allocation3] ss:$2 sm:$0xff] }
  0x2f   :  { %v1116_v28 = vld [vmem:[#allocation8 + $0x8] sm:$0xff]   ;;  %v1120_v34 = vld [vmem:[#allocation8] sm:$0xff]   ;;  %v77_v43 = vrot.slane %v1286_v39, %v76_v31  ;;  %v1289_v45 = vld [vmem:[#allocation3 + $0x1] ss:$2 sm:$0xff]  ;;  %v85_v54 = vrot.slane %v1286_v39, %v84_v33  ;;  %v73_v60 = vrot.slane %v1286_v39, %v72_v35  ;;  %v81_v63 = vrot.slane %v1286_v39, %v80_v37 }
  0x30   :  { %1001 = vmatpush3.bf16.msra.mxu0 %v1100_v10  ;;  %v1117_v29 = vld [vmem:[#allocation8 + $0x88] sm:$0xff]   ;;  %v1121_v36 = vld [vmem:[#allocation8 + $0x80] sm:$0xff]   ;;  %v148_v49 = vrot.slane %v1289_v45, %v76_v31  ;;  %v1122_v52 = vld [vmem:[#allocation8 + $0x178] sm:$0xff]   ;;  %v156_v59 = vrot.slane %v1289_v45, %v84_v33  ;;  %v144_v61 = vrot.slane %v1289_v45, %v72_v35  ;;  %v152_v0 = vrot.slane %v1289_v45, %v80_v37 }
  0x31   :  { %1023 = vmatpush3.bf16.msra.mxu1 %v1101_v11  ;;  %1002 = vmatprep.subr.bf16.mxu0 %v1102_v12  ;;  %v56_v38 = vld [vmem:[#allocation6] sm:$0x33]  ;;  %v126_v40 = vld [vmem:[#allocation6] sm:$0xcc]  ;;  %v57_v46 = vld [vmem:[#allocation6 + $0x8] sm:$0x33] }
  0x32   :  { %1024 = vmatprep.subr.bf16.mxu1 %v1103_v13  ;;  %v60_v41 = vunpack.c.l.bf16 %v56_v38  ;;  %v61_v42 = vunpack.c.h.bf16 %v56_v38  ;;  %v130_v44 = vunpack.c.l.bf16 %v126_v40  ;;  %v127_v47 = vld [vmem:[#allocation6 + $0x8] sm:$0xcc]  ;;  %v131_v48 = vunpack.c.h.bf16 %v126_v40  ;;  %v1123_v57 = vld [vmem:[#allocation8 + $0x1f8] sm:$0xff]   ;;  %v1126_v12 = vld [vmem:[#allocation8 + $0x170] sm:$0xff]  }
  0x33   :  { %v62_v50 = vunpack.c.l.bf16 %v57_v46  ;;  %v63_v51 = vunpack.c.h.bf16 %v57_v46  ;;  %v132_v55 = vunpack.c.l.bf16 %v127_v47  ;;  %v133_v56 = vunpack.c.h.bf16 %v127_v47  ;;  %v1124_v7 = vld [vmem:[#allocation8 + $0x138] sm:$0xff]   ;;  %v1131_v21 = vld [vmem:[#allocation8 + $0x1e8] sm:$0xff]   ;;  %v1142_v37 = vld [vmem:[#allocation8 + $0x150] sm:$0xff]  }
  0x34   :  { %1003 = vmatpush3.bf16.msra.mxu0 %v1104_v14  ;;  %v111_v53 = vadd.f32 %v77_v43, %v61_v42  ;;  %v182_v58 = vadd.f32 %v148_v49, %v131_v48  ;;  %v110_v2 = vadd.f32 %v73_v60, %v60_v41  ;;  %v181_v3 = vadd.f32 %v144_v61, %v130_v44  ;;  %v1125_v9 = vld [vmem:[#allocation8 + $0x1b8] sm:$0xff]   ;;  %v1143_v38 = vld [vmem:[#allocation8 + $0x1d0] sm:$0xff]  }
  0x35   :  { %1025 = vmatpush3.bf16.msra.mxu1 %v1105_v15  ;;  %1004 = vmatprep.subr.bf16.mxu0 %v1106_v16  ;;  %v113_v62 = vadd.f32 %v85_v54, %v63_v51  ;;  %v184_v1 = vadd.f32 %v156_v59, %v133_v56  ;;  %v112_v4 = vadd.f32 %v81_v63, %v62_v50  ;;  %v1139_v31 = vld [vmem:[#allocation8 + $0x1d8] sm:$0xff]   ;;  %v1144_v40 = vld [vmem:[#allocation8 + $0x110] sm:$0xff]   ;;  %v1147_v59 = vld [vmem:[#allocation8 + $0x1c8] sm:$0xff]  }
  0x36   :  { %1026 = vmatprep.subr.bf16.mxu1 %v1107_v17  ;;  %119 = vst [vmem:[#allocation2] sm:$0xf] %v111_v53  ;;  %190 = vst [vmem:[#allocation2] sm:$0xf0] %v182_v58  ;;  %v183_v5 = vadd.f32 %v152_v0, %v132_v55  ;;  %v1127_v17 = vld [vmem:[#allocation8 + $0x1f0] sm:$0xff]   ;;  %v1140_v33 = vld [vmem:[#allocation8 + $0x118] sm:$0xff]  }
  0x37   :  { %121 = vst [vmem:[#allocation2 + $0x10] sm:$0xf] %v113_v62  ;;  %192 = vst [vmem:[#allocation2 + $0x10] sm:$0xf0] %v184_v1  ;;  %v1141_v35 = vld [vmem:[#allocation8 + $0x198] sm:$0xff]   ;;  %v1145_v46 = vld [vmem:[#allocation8 + $0x190] sm:$0xff]  }
  0x38   :  { %1005 = vmatpush3.bf16.msra.mxu0 %v1108_v18  ;;  %118 = vst [vmem:[#allocation2 + $0x30] sm:$0xf] %v110_v2  ;;  %189 = vst [vmem:[#allocation2 + $0x30] sm:$0xf0] %v181_v3  ;;  %v1128_v18 = vld [vmem:[#allocation8 + $0x130] sm:$0xff]  }
  0x39   :  { %1027 = vmatpush3.bf16.msra.mxu1 %v1109_v19  ;;  %1006 = vmatprep.subr.bf16.mxu0 %v1110_v20  ;;  %120 = vst [vmem:[#allocation2 + $0x18] sm:$0xf] %v112_v4  ;;  %191 = vst [vmem:[#allocation2 + $0x18] sm:$0xf0] %v183_v5  ;;  %v1129_v19 = vld [vmem:[#allocation8 + $0x1b0] sm:$0xff]   ;;  %v1130_v20 = vld [vmem:[#allocation8 + $0x168] sm:$0xff]  }
  0x3a   :  { %1028 = vmatprep.subr.bf16.mxu1 %v1111_v22  ;;  %v1132_v22 = vld [vmem:[#allocation8 + $0x128] sm:$0xff]   ;;  %v58_v47 = vld [vmem:[#allocation6 + $0x10] sm:$0x33]  ;;  %v128_v48 = vld [vmem:[#allocation6 + $0x10] sm:$0xcc] }
  0x3b   :  { %v64_v53 = vunpack.c.l.bf16 %v58_v47  ;;  %v65_v54 = vunpack.c.h.bf16 %v58_v47  ;;  %v134_v55 = vunpack.c.l.bf16 %v128_v48  ;;  %v135_v56 = vunpack.c.h.bf16 %v128_v48  ;;  %v129_v58 = vld [vmem:[#allocation6 + $0x18] sm:$0xcc] }
  0x3c   :  { %1007 = vmatpush3.bf16.msra.mxu0 %v1112_v23  ;;  %v1133_v23 = vld [vmem:[#allocation8 + $0x1a8] sm:$0xff]   ;;  %v136_v62 = vunpack.c.l.bf16 %v129_v58  ;;  %v137_v63 = vunpack.c.h.bf16 %v129_v58 }
  0x3d   :  { %1029 = vmatpush3.bf16.msra.mxu1 %v1113_v24  ;;  %1008 = vmatprep.subr.bf16.mxu0 %v1114_v25  ;;  %v198_v6 = vld [vmem:[#allocation2] sm:$0xff]  ;;  %v1134_v24 = vld [vmem:[#allocation8 + $0x160] sm:$0xff]  }
  0x3e   :  { %1030 = vmatprep.subr.bf16.mxu1 %v1115_v27  ;;  %v206_v8 = vpack.c.bf16 %v198_v6, %v198_v6  ;;  %v200_v10 = vld [vmem:[#allocation2 + $0x10] sm:$0xff] }
  0x3f   :  { %v197_v11 = vld [vmem:[#allocation2 + $0x30] sm:$0xff]  ;;  %v208_v13 = vpack.c.bf16 %v200_v10, %v200_v10 }
  0x40   :  { %1009 = vmatpush3.bf16.msra.mxu0 %v1116_v28  ;;  %757 = vmatprep.mubr.bf16.mxu0 %v206_v8  ;;  %v205_v14 = vpack.c.bf16 %v197_v11, %v197_v11  ;;  %v199_v15 = vld [vmem:[#allocation2 + $0x18] sm:$0xff]  ;;  %v1135_v25 = vld [vmem:[#allocation8 + $0x1e0] sm:$0xff]  }
  0x41   :  { %1031 = vmatpush3.bf16.msra.mxu1 %v1117_v29  ;;  %1010 = vmatprep.subr.bf16.mxu0 %v1118_v30  ;;  %v207_v16 = vpack.c.bf16 %v199_v15, %v199_v15  ;;  %v1136_v27 = vld [vmem:[#allocation8 + $0x120] sm:$0xff]   ;;  %v1138_v29 = vld [vmem:[#allocation8 + $0x158] sm:$0xff]   ;;  %v92_v30 = vsub.s32 5, %v1280_v26 }
  0x42   :  { %1032 = vmatprep.subr.bf16.mxu1 %v1119_v32  ;;  %797 = vmatprep.mubr.bf16.mxu1 %v208_v13  ;;  %v1137_v28 = vld [vmem:[#allocation8 + $0x1a0] sm:$0xff]   ;;  %v100_v32 = vsub.s32 7, %v1280_v26 }
  0x43   :  { %v93_v41 = vrot.slane %v1286_v39, %v92_v30  ;;  %v164_v42 = vrot.slane %v1289_v45, %v92_v30  ;;  %v1150_v8 = vld [vmem:[#allocation8 + $0x140] sm:$0xff]  }
  0x44   :  { %1011 = vmatpush3.bf16.msra.mxu0 %v1120_v34  ;;  %v88_v34 = vsub.s32 4, %v1280_v26  ;;  %v172_v49 = vrot.slane %v1289_v45, %v100_v32  ;;  %v1152_v10 = vld [vmem:[#allocation8 + $0x100] sm:$0xff]  }
  0x45   :  { %1033 = vmatpush3.bf16.msra.mxu1 %v1121_v36  ;;  %1040 = vmatprep.subr.bf16.mxu0 %v1122_v52  ;;  %v96_v36 = vsub.s32 6, %v1280_v26  ;;  %v101_v26 = vrot.slane %v1286_v39, %v100_v32  ;;  %v1146_v52 = vld [vmem:[#allocation8 + $0x148] sm:$0xff]   ;;  %v115_v0 = vadd.f32 %v93_v41, %v65_v54  ;;  %v186_v1 = vadd.f32 %v164_v42, %v135_v56  ;;  %v1153_v11 = vld [vmem:[#allocation8 + $0x180] sm:$0xff]  }
  0x46   :  { %1062 = vmatprep.subr.bf16.mxu1 %v1123_v57  ;;  %v89_v43 = vrot.slane %v1286_v39, %v88_v34  ;;  %v160_v44 = vrot.slane %v1289_v45, %v88_v34  ;;  %v59_v57 = vld [vmem:[#allocation6 + $0x18] sm:$0x33]  ;;  %v188_v4 = vadd.f32 %v172_v49, %v137_v63 }
  0x47   :  { %758 = vmatmul.mubr.bf16.vlgmr.msra.gmra.mxu0 %v205_v14  ;;  %v97_v50 = vrot.slane %v1286_v39, %v96_v36  ;;  %v168_v51 = vrot.slane %v1289_v45, %v96_v36  ;;  %v66_v60 = vunpack.c.l.bf16 %v59_v57  ;;  %v67_v61 = vunpack.c.h.bf16 %v59_v57  ;;  %v1148_v45 = vld [vmem:[#allocation8 + $0x108] sm:$0xff]   ;;  %123 = vst [vmem:[#allocation2 + $0x20] sm:$0xf] %v115_v0  ;;  %194 = vst [vmem:[#allocation2 + $0x20] sm:$0xf0] %v186_v1 }
  0x48   :  { %798 = vmatmul.mubr.bf16.vlgmr.msra.gmra.mxu1 %v207_v16  ;;  %1041 = vmatpush3.bf16.msra.mxu0 %v1124_v7  ;;  %v114_v39 = vadd.f32 %v89_v43, %v64_v53  ;;  %v185_v2 = vadd.f32 %v160_v44, %v134_v55  ;;  %v1149_v7 = vld [vmem:[#allocation8 + $0x188] sm:$0xff]   ;;  %196 = vst [vmem:[#allocation2 + $0x38] sm:$0xf0] %v188_v4 }
  0x49   :  { %1063 = vmatpush3.bf16.msra.mxu1 %v1125_v9  ;;  %1042 = vmatprep.subr.bf16.mxu0 %v1126_v12  ;;  %v117_v3 = vadd.f32 %v101_v26, %v67_v61  ;;  %v116_v5 = vadd.f32 %v97_v50, %v66_v60  ;;  %v187_v6 = vadd.f32 %v168_v51, %v136_v62  ;;  %v1151_v9 = vld [vmem:[#allocation8 + $0x1c0] sm:$0xff]   ;;  %v995_v61 = vld [vmem:[%s1319_s3] ss:$0 sm:$0xff] }
  0x4a   :  { %1064 = vmatprep.subr.bf16.mxu1 %v1127_v17  ;;  %122 = vst [vmem:[#allocation2 + $0x8] sm:$0xf] %v114_v39  ;;  %193 = vst [vmem:[#allocation2 + $0x8] sm:$0xf0] %v185_v2 }
  0x4b   :  { %125 = vst [vmem:[#allocation2 + $0x38] sm:$0xf] %v117_v3  ;;  %124 = vst [vmem:[#allocation2 + $0x28] sm:$0xf] %v116_v5 }
  0x4c   :  { %1043 = vmatpush3.bf16.msra.mxu0 %v1128_v18  ;;  %195 = vst [vmem:[#allocation2 + $0x28] sm:$0xf0] %v187_v6 }
  0x4d   :  { %1065 = vmatpush3.bf16.msra.mxu1 %v1129_v19  ;;  %1044 = vmatprep.subr.bf16.mxu0 %v1130_v20 }
  0x4e   :  { %1066 = vmatprep.subr.bf16.mxu1 %v1131_v21  ;;  %v202_v12 = vld [vmem:[#allocation2 + $0x20] sm:$0xff] }
  0x4f   :  { %v210_v14 = vpack.c.bf16 %v202_v12, %v202_v12 }
  0x50   :  { %1045 = vmatpush3.bf16.msra.mxu0 %v1132_v22 }
  0x51   :  { %1067 = vmatpush3.bf16.msra.mxu1 %v1133_v23  ;;  %1046 = vmatprep.subr.bf16.mxu0 %v1134_v24  ;;  %v201_v13 = vld [vmem:[#allocation2 + $0x8] sm:$0xff] }
  0x52   :  { %1068 = vmatprep.subr.bf16.mxu1 %v1135_v25  ;;  %v204_v15 = vld [vmem:[#allocation2 + $0x38] sm:$0xff]  ;;  %v209_v16 = vpack.c.bf16 %v201_v13, %v201_v13  ;;  %837 = vmatprep.mubr.bf16.mxu0 %v210_v14 }
  0x53   :  { %v203_v17 = vld [vmem:[#allocation2 + $0x28] sm:$0xff]  ;;  %v212_v18 = vpack.c.bf16 %v204_v15, %v204_v15 }
  0x54   :  { %1047 = vmatpush3.bf16.msra.mxu0 %v1136_v27  ;;  %v211_v19 = vpack.c.bf16 %v203_v17, %v203_v17 }
  0x55   :  { %1069 = vmatpush3.bf16.msra.mxu1 %v1137_v28  ;;  %1048 = vmatprep.subr.bf16.mxu0 %v1138_v29 }
  0x56   :  { %1070 = vmatprep.subr.bf16.mxu1 %v1139_v31  ;;  %877 = vmatprep.mubr.bf16.mxu1 %v212_v18 }
  0x58   :  { %1049 = vmatpush3.bf16.msra.mxu0 %v1140_v33 }
  0x59   :  { %1071 = vmatpush3.bf16.msra.mxu1 %v1141_v35  ;;  %1050 = vmatprep.subr.bf16.mxu0 %v1142_v37 }
  0x5a   :  { %1072 = vmatprep.subr.bf16.mxu1 %v1143_v38 }
  0x5c   :  { %1051 = vmatpush3.bf16.msra.mxu0 %v1144_v40 }
  0x5d   :  { %1073 = vmatpush3.bf16.msra.mxu1 %v1145_v46  ;;  %1052 = vmatprep.subr.bf16.mxu0 %v1146_v52 }
  0x5e   :  { %1074 = vmatprep.subr.bf16.mxu1 %v1147_v59 }
  0x60   :  { %1053 = vmatpush3.bf16.msra.mxu0 %v1148_v45 }
  0x61   :  { %1075 = vmatpush3.bf16.msra.mxu1 %v1149_v7  ;;  %1054 = vmatprep.subr.bf16.mxu0 %v1150_v8 }
  0x62   :  { %1076 = vmatprep.subr.bf16.mxu1 %v1151_v9 }
  0x64   :  { %1055 = vmatpush3.bf16.msra.mxu0 %v1152_v10 }
  0x65   :  { %1077 = vmatpush3.bf16.msra.mxu1 %v1153_v11 }
  0x67   :  { %838 = vmatmul.mubr.bf16.vlgmr.msra.gmra.mxu0 %v209_v16 }
  0x68   :  { %878 = vmatmul.mubr.bf16.vlgmr.msra.gmra.mxu1 %v211_v19 }
 0x107   :  { %v1012_v20 = vpop.f32.mrf.mxu0 }
 0x108   :  { %v1034_v21 = vpop.f32.mrf.mxu1 }
 0x109   :  { %v1013_v22 = vpop.f32.mrf.mxu0 }
 0x10a   :  { %v1035_v23 = vpop.f32.mrf.mxu1  ;;  %v1014_v29 = vadd.f32 %v1013_v22, %v1012_v20 }
 0x10b   :  { %v1015_v24 = vpop.f32.mrf.mxu0  ;;  %v1036_v30 = vadd.f32 %v1035_v23, %v1034_v21 }
 0x10c   :  { %v1037_v25 = vpop.f32.mrf.mxu1 }
 0x10d   :  { %v1016_v27 = vpop.f32.mrf.mxu0  ;;  %v800_v34 = vadd.f32 %v1036_v30, %v1014_v29 }
 0x10e   :  { %v1038_v28 = vpop.f32.mrf.mxu1 }
 0x127   :  { %v1056_v31 = vpop.f32.mrf.mxu0 }
 0x128   :  { %v1078_v32 = vpop.f32.mrf.mxu1 }
 0x129   :  { %v1057_v33 = vpop.f32.mrf.mxu0 }
 0x12a   :  { %v1058_v35 = vadd.f32 %v1057_v33, %v1056_v31  ;;  %v1079_v36 = vpop.f32.mrf.mxu1 }
 0x12b   :  { %v1059_v37 = vpop.f32.mrf.mxu0  ;;  %v1080_v40 = vadd.f32 %v1079_v36, %v1078_v32 }
 0x12c   :  { %v840_v38 = vadd.f32 %v1058_v35, %v800_v34  ;;  %v1081_v41 = vpop.f32.mrf.mxu1 }
 0x12d   :  { %v1060_v42 = vpop.f32.mrf.mxu0 }
 0x12e   :  { %v880_v43 = vadd.f32 %v1080_v40, %v840_v38  ;;  %v1082_v44 = vpop.f32.mrf.mxu1 }
 0x130   :  { %v886_v46 = vsel %vm885_vm0, %v880_v43, 0.0  ;;  %v894_v47 = vrot.slane %v880_v43, 4 }
 0x131   :  { %v887_v48 = vrot.slane %v886_v46, 4 }
 0x132   :  { %v896_v26 = vsel %vm885_vm0, %v894_v47, 0.0 }
 0x133   :  { %v888_v49 = vadd.f32 %v887_v48, %v886_v46  ;;  %v897_v50 = vrot.slane %v896_v26, 4 }
 0x135   :  { %v889_v51 = vrot.slane %v888_v49, 2  ;;  %v898_v52 = vadd.f32 %v897_v50, %v896_v26 }
 0x137   :  { %v890_v53 = vadd.f32 %v889_v51, %v888_v49  ;;  %v899_v54 = vrot.slane %v898_v52, 2 }
 0x139   :  { %v891_v55 = vrot.slane %v890_v53, 1  ;;  %v900_v56 = vadd.f32 %v899_v54, %v898_v52 }
 0x13b   :  { %v901_v57 = vrot.slane %v900_v56, 1  ;;  %v892_v58 = vadd.f32 %v891_v55, %v890_v53 }
 0x13d   :  { %v902_v59 = vadd.f32 %v901_v57, %v900_v56 }
 0x13f   :  { %v904_v60 = vsel %vm903_vm1, %v892_v58, %v902_v59 }
 0x140   :  { %v905_v62 = vmul.f32 0.25, %v904_v60 }
 0x142   :  { %v913_v63 = vadd.f32 %v995_v61, %v905_v62 }
 0x144   :  { %914 = vst [vmem:[#allocation9] sm:$0x3] %v913_v63 }
 0x145   :  { %1225 = shalt.err (!%p1222_p5)
}
 0x146   :  { %924 = dma.vmem_to_hbm [thread:$0]  %s922_s6, 32, %s1320_s4, [#allocation5]  }
 0x147   :  { %1238 = dma.done.wait [#allocation5], 32  }
 0x148   :  { %1239 = vsyncadd [#allocation5], 4294967264 }
 0x149   :  { %928 = vsyncpa [#allocation4], 1 }
 0x14a   :  { %929 = vsyncpa [#allocation7], 1 }
 0x14b   :  { %930 = vsyncpa [#allocation5], 1 }

</bundles_post_ra>
